<compile_context>
chip_gen: v6e
topology: v6e:2x2x1
jax: 0.10.0
libtpu: 0.0.40
codegen_flags: <defaults>
</compile_context>

<pallas_src>
import functools

import jax
import jax.numpy as jnp
from jax import lax
from jax.experimental import pallas as pl
from jax.experimental.pallas import tpu as pltpu

LANES = 128
TARGET_TILE_BYTES = 2 * 1024 * 1024      # per input, per pipeline buffer
VMEM_LIMIT_BYTES = 48 * 1024 * 1024      # < 64 MiB v7x physical; harmless on v5e/v6e


def _rmse_partial_kernel(yhat_ref, y_ref, out_ref, *, block_rows,
                         last_block_valid_rows, num_blocks):
    d = yhat_ref[...].astype(jnp.float32) - y_ref[...].astype(jnp.float32)
    sq = d * d

    def _reduce(t):
        # Reduce (block_rows, 128) -> (8, 128) with plain vreg adds on the VPU
        # (no per-step full cross-lane XLU reduce, better f32 accuracy).
        main = (block_rows // 8) * 8
        if main > 0:
            psum = jnp.sum(t[:main].reshape(-1, 8, LANES), axis=0)
        else:
            psum = jnp.zeros((8, LANES), jnp.float32)
        rem = block_rows - main  # only nonzero for tiny inputs (rows < 8)
        if rem > 0:
            psum = psum.at[:rem, :].add(t[main:, :])
        return psum

    # Default (all full blocks): unmasked partial sum.
    out_ref[0, :, :] = _reduce(sq)

    # Only the last block can overrun the true row count; its out-of-range
    # rows read unspecified VMEM (possibly NaN/Inf), so mask them with a
    # cheap row-only compare and overwrite the partial -- last block only.
    if last_block_valid_rows != block_rows:
        @pl.when(pl.program_id(0) == num_blocks - 1)
        def _():
            row_ids = lax.broadcasted_iota(jnp.int32, (block_rows, LANES), 0)
            masked = jnp.where(row_ids < last_block_valid_rows, sq,
                               jnp.float32(0.0))
            out_ref[0, :, :] = _reduce(masked)


def _choose_block_rows(rows, itemsize, tile_bytes):
    """Dtype-aware tile: constant bytes per step (bf16 gets 2x rows of f32)."""
    max_rows = max(8, (tile_bytes // (LANES * itemsize)) // 8 * 8)
    if rows <= max_rows:
        return rows          # full extent -> always a legal block shape
    return max_rows          # multiple of 8; last block partial (masked)


def rmse_loss(yhat, y, eps=1e-6, tile_bytes=TARGET_TILE_BYTES):
    assert yhat.shape == y.shape, "yhat / y shape mismatch"
    n_elems = int(yhat.size)
    assert n_elems > 0

    yhat_flat = yhat.reshape(-1)
    y_flat = y.reshape(-1)

    main = (n_elems // LANES) * LANES
    tail = n_elems - main

    total = jnp.float32(0.0)

    # Ragged (<128) tail: tiny plain-JAX reduction -- no full-array pad copy.
    if tail > 0:
        dt = (yhat_flat[main:].astype(jnp.float32)
              - y_flat[main:].astype(jnp.float32))
        total = total + jnp.sum(dt * dt)

    if main > 0:
        rows = main // LANES
        yhat2d = yhat_flat[:main].reshape(rows, LANES)
        y2d = y_flat[:main].reshape(rows, LANES)

        itemsize = max(jnp.dtype(yhat.dtype).itemsize,
                       jnp.dtype(y.dtype).itemsize)
        block_rows = _choose_block_rows(rows, itemsize, tile_bytes)
        num_blocks = pl.cdiv(rows, block_rows)
        last_valid = rows - (num_blocks - 1) * block_rows

        kernel = functools.partial(
            _rmse_partial_kernel,
            block_rows=block_rows,
            last_block_valid_rows=last_valid,
            num_blocks=num_blocks,
        )

        partials = pl.pallas_call(
            kernel,
            out_shape=jax.ShapeDtypeStruct((num_blocks, 8, LANES),
                                           jnp.float32),
            grid_spec=pltpu.PrefetchScalarGridSpec(
                num_scalar_prefetch=0,
                grid=(num_blocks,),
                in_specs=[
                    pl.BlockSpec((block_rows, LANES), lambda i: (i, 0)),
                    pl.BlockSpec((block_rows, LANES), lambda i: (i, 0)),
                ],
                out_specs=pl.BlockSpec((1, 8, LANES), lambda i: (i, 0, 0)),
            ),
            compiler_params=pltpu.CompilerParams(
                # Pure streaming map, no cross-step state -> parallel lets the
                # compiler shard grid steps across TensorCores on v7x.
                dimension_semantics=("parallel",),
                vmem_limit_bytes=VMEM_LIMIT_BYTES,
            ),
        )(yhat2d, y2d)

        total = total + jnp.sum(partials)

    mse = total / jnp.float32(n_elems)
    return jnp.sqrt(mse + jnp.float32(eps))


def rmse_loss_ref(yhat, y, eps=1e-6):
    mse = jnp.mean((yhat.astype(jnp.float32) - y.astype(jnp.float32)) ** 2)
    return jnp.sqrt(mse + jnp.float32(eps))


if __name__ == "__main__":
    key = jax.random.PRNGKey(0)
    k1, k2, k3, k4 = jax.random.split(key, 4)

    # Small NCHW-shaped example inputs (the loss itself is shape-agnostic).
    shape = (2, 4, 16, 16)
    yhat = jax.random.normal(k1, shape, dtype=jnp.float32)
    y = jax.random.normal(k2, shape, dtype=jnp.float32)

    loss = rmse_loss(yhat, y)
    jax.block_until_ready(loss)
    ref = rmse_loss_ref(yhat, y)
    assert jnp.allclose(loss, ref, rtol=1e-5, atol=1e-6), (loss, ref)

    # Ragged size < 128: handled entirely by the plain-JAX tail path.
    shape2 = (3, 5, 7)
    yhat2 = jax.random.normal(k3, shape2, dtype=jnp.float32)
    y2 = jax.random.normal(k4, shape2, dtype=jnp.float32)
    loss2 = rmse_loss(yhat2, y2)
    jax.block_until_ready(loss2)
    ref2 = rmse_loss_ref(yhat2, y2)
    assert jnp.allclose(loss2, ref2, rtol=1e-5, atol=1e-6), (loss2, ref2)

    # bf16 inputs: streamed natively (half the HBM bytes), upcast in-kernel.
    yhat3 = yhat.astype(jnp.bfloat16)
    y3 = y.astype(jnp.bfloat16)
    loss3 = rmse_loss(yhat3, y3)
    jax.block_until_ready(loss3)
    ref3 = rmse_loss_ref(yhat3, y3)
    assert jnp.allclose(loss3, ref3, rtol=1e-4, atol=1e-5), (loss3, ref3)

    # Multi-block + partial last block + ragged tail: force tiny 8-row tiles
    # so rows=35 -> 5 blocks with 3 valid rows in the last (exercises the
    # pl.when last-block row mask), plus a 5-element plain-JAX tail.
    n4 = 35 * LANES + 5
    k5, k6 = jax.random.split(k4)
    yhat4 = jax.random.normal(k5, (n4,), dtype=jnp.float32)
    y4 = jax.random.normal(k6, (n4,), dtype=jnp.float32)
    loss4 = rmse_loss(yhat4, y4, tile_bytes=8 * LANES * 4)
    jax.block_until_ready(loss4)
    ref4 = rmse_loss_ref(yhat4, y4)
    assert jnp.allclose(loss4, ref4, rtol=1e-5, atol=1e-6), (loss4, ref4)

    print("KERNEL_OK")
</pallas_src>

<mosaic_0001>
module attributes {stable_mosaic.version = 11 : i64} {
  func.func @_rmse_partial_kernel(%arg0: i32, %arg1: memref<16x128xf32, #tpu.memory_space<vmem>>, %arg2: memref<16x128xf32, #tpu.memory_space<vmem>>, %arg3: memref<1x8x128xf32, #tpu.memory_space<vmem>>) attributes {dimension_semantics = [#tpu.dimension_semantics<parallel>], iteration_bounds = array<i64: 1>, scalar_prefetch = 0 : i64, scratch_operands = 0 : i64, tpu.core_type = #tpu.core_type<tc>, window_params = [{transform_indices = @transform_0, window_bounds = array<i64: 16, 128>}, {transform_indices = @transform_1, window_bounds = array<i64: 16, 128>}, {transform_indices = @transform_2, window_bounds = array<i64: 1, 8, 128>}]} {
    %c0 = arith.constant 0 : index
    %c0_0 = arith.constant 0 : index
    %0 = vector.load %arg1[%c0, %c0_0] : memref<16x128xf32, #tpu.memory_space<vmem>>, vector<16x128xf32>
    %c0_1 = arith.constant 0 : index
    %c0_2 = arith.constant 0 : index
    %1 = vector.load %arg2[%c0_1, %c0_2] : memref<16x128xf32, #tpu.memory_space<vmem>>, vector<16x128xf32>
    %2 = arith.subf %0, %1 : vector<16x128xf32>
    %3 = arith.mulf %2, %2 : vector<16x128xf32>
    %4 = vector.shape_cast %3 : vector<16x128xf32> to vector<2x8x128xf32>
    %cst = arith.constant dense<0.000000e+00> : vector<8x128xf32>
    %5 = vector.multi_reduction <add>, %4, %cst [0] : vector<2x8x128xf32> to vector<8x128xf32>
    %c0_3 = arith.constant 0 : index
    %c0_4 = arith.constant 0 : index
    %c0_5 = arith.constant 0 : index
    %6 = vector.load %arg3[%c0_3, %c0_4, %c0_5] : memref<1x8x128xf32, #tpu.memory_space<vmem>>, vector<1x8x128xf32>
    %7 = vector.shape_cast %6 : vector<1x8x128xf32> to vector<8x128xf32>
    %8 = vector.shape_cast %5 : vector<8x128xf32> to vector<1x8x128xf32>
    tpu.vector_store %arg3[%c0_3, %c0_4, %c0_5], %8 {strides = array<i32>} : memref<1x8x128xf32, #tpu.memory_space<vmem>>, vector<1x8x128xf32>,
    return
  }
  func.func @transform_0(%arg0: i32) -> (i32, i32) {
    %c0_i32 = arith.constant 0 : i32
    %c0_i32_0 = arith.constant 0 : i32
    return %arg0, %c0_i32 : i32, i32
  }
  func.func @transform_1(%arg0: i32) -> (i32, i32) {
    %c0_i32 = arith.constant 0 : i32
    %c0_i32_0 = arith.constant 0 : i32
    return %arg0, %c0_i32 : i32, i32
  }
  func.func @transform_2(%arg0: i32) -> (i32, i32, i32) {
    %c0_i32 = arith.constant 0 : i32
    %c0_i32_0 = arith.constant 0 : i32
    %c0_i32_1 = arith.constant 0 : i32
    return %arg0, %c0_i32, %c0_i32_0 : i32, i32, i32
  }
}

</mosaic_0001>

<bundles_post_ra>
// kernel: tpu_custom_call.1
= control target key start
LH: loop header
LB: loop body
LE: loop exit
PB: predicated region body
PF: predicated region fallthrough
CT: control target
= control target key end

     0   :  { %7 = vsyncpa [#allocation3], 0  ;;  %s166_s0 = inlined_call_operand.hbm [shape: f32[16,128], index: 0, kind: input, shape index: {}]   ;;  %s167_s1 = inlined_call_operand.hbm [shape: f32[16,128], index: 1, kind: input, shape index: {}]   ;;  %s168_s2 = inlined_call_operand.hbm [shape: f32[1,8,128], index: 2, kind: output, shape index: {}]  }
   0x1   :  { %8 = vsyncpa [#allocation6], 0 }
   0x2   :  { %9 = vsyncpa [#allocation4], 0  ;;  %s137_s9 = smov [#allocation2]  }
   0x3   :  { %s15_s10 = sshll.u32 %s137_s9, 4  ;;  %s16_s10 = int_to_ptr.vmem [resolvable:$true] %s15_s10 }
   0x4   :  { %s79_s11 = scalar_lea.vmem %s16_s10, 256  ;;  %p84_p1 = scmp.lt.s32.totalorder %s16_s10, %s16_s10 }
   0x5   :  { %p80_p0 = scmp.ne.s32.totalorder %s16_s10, %s79_s11  ;;  %p85_p2 = scmp.lt.s32.totalorder %s79_s11, %s79_s11 }
   0x7   :  { %p86_p3 = por %p85_p2, %p84_p1 }
   0x9   :  { %p87_p4 = pnand %p86_p3, %p80_p0 }
   0xb   :  { %90 = shalt.err (!%p87_p4)
}
   0xc   :  { %s138_s12 = smov 128   ;;  %s139_s13 = smov 8  }
   0xd   :  { %21 = dma.hbm_to_vmem [thread:$0]  %s166_s0, 256, %s16_s10, [#allocation3], %s138_s12, %s138_s12, %s139_s13  }
   0xe   :  { %s140_s16 = smov [#allocation5]  }
   0xf   :  { %s27_s17 = sshll.u32 %s140_s16, 4  ;;  %s28_s17 = int_to_ptr.vmem [resolvable:$true] %s27_s17 }
  0x10   :  { %s99_s18 = scalar_lea.vmem %s28_s17, 256  ;;  %p104_p6 = scmp.lt.s32.totalorder %s28_s17, %s28_s17 }
  0x11   :  { %p100_p5 = scmp.ne.s32.totalorder %s28_s17, %s99_s18  ;;  %p105_p7 = scmp.lt.s32.totalorder %s99_s18, %s99_s18 }
  0x13   :  { %p106_p8 = por %p105_p7, %p104_p6 }
  0x15   :  { %p107_p9 = pnand %p106_p8, %p100_p5 }
  0x17   :  { %110 = shalt.err (!%p107_p9)
}
  0x18   :  { %33 = dma.hbm_to_vmem [thread:$0]  %s167_s1, 256, %s28_s17, [#allocation6], %s138_s12, %s138_s12, %s139_s13  }
  0x19   :  { %131 = dma.done.wait [#allocation3], 256  }
  0x1a   :  { %132 = vsyncadd [#allocation3], 4294967040 }
  0x1b   :  { %133 = dma.done.wait [#allocation6], 256  }
  0x1c   :  { %134 = vsyncadd [#allocation6], 4294967040  ;;  %v40_v0 = vld [vmem:[#allocation2] sm:$0xff]  ;;  %v41_v1 = vld [vmem:[#allocation2 + $0x8] sm:$0xff]  ;;  %s141_s0 = smov [#allocation7]  }
  0x1d   :  { %v42_v2 = vld [vmem:[#allocation5] sm:$0xff]  ;;  %v43_v3 = vld [vmem:[#allocation5 + $0x8] sm:$0xff]  ;;  %s56_s21 = sshll.u32 %s141_s0, 4  ;;  %s57_s21 = int_to_ptr.vmem [resolvable:$true] %s56_s21 }
  0x1e   :  { %v44_v4 = vsub.f32 %v40_v0, %v42_v2  ;;  %v45_v5 = vsub.f32 %v41_v1, %v43_v3  ;;  %s111_s22 = scalar_lea.vmem %s57_s21, 128  ;;  %p116_p11 = scmp.lt.s32.totalorder %s57_s21, %s57_s21 }
  0x1f   :  { %p112_p10 = scmp.ne.s32.totalorder %s57_s21, %s111_s22  ;;  %p117_p12 = scmp.lt.s32.totalorder %s111_s22, %s111_s22 }
  0x20   :  { %v46_v6 = vmul.f32 %v44_v4, %v44_v4  ;;  %v47_v7 = vmul.f32 %v45_v5, %v45_v5 }
  0x21   :  { %p118_p13 = por %p117_p12, %p116_p11 }
  0x22   :  { %v48_v8 = vadd.f32 %v47_v7, %v46_v6 }
  0x23   :  { %p119_p0 = pnand %p118_p13, %p112_p10 }
  0x24   :  { %49 = vst [vmem:[#allocation7] sm:$0xff] %v48_v8 }
  0x25   :  { %122 = shalt.err (!%p119_p0)
}
  0x26   :  { %59 = dma.vmem_to_hbm [thread:$0]  %s57_s21, 128, %s168_s2, [#allocation4]  }
  0x27   :  { %135 = dma.done.wait [#allocation4], 128  }
  0x28   :  { %136 = vsyncadd [#allocation4], 4294967168 }
  0x29   :  { %63 = vsyncpa [#allocation3], 1 }
  0x2a   :  { %64 = vsyncpa [#allocation6], 1 }
  0x2b   :  { %65 = vsyncpa [#allocation4], 1 }

</bundles_post_ra>
